<compile_context>
chip_gen: v5e
topology: v5e:2x2
jax: 0.10.0
libtpu: 0.0.40
codegen_flags: <defaults>
</compile_context>

<pallas_src>
import math

import jax
import jax.numpy as jnp
from jax.experimental import pallas as pl
from jax.experimental.pallas import tpu as pltpu

# ---- model hyperparameters (small, consistent with the module's forward) ----
BATCH = 2
SEQ = 8
INPUT_DIM = 16
D_MODEL = 32
NUM_HEADS = 4
HEAD_DIM = D_MODEL // NUM_HEADS


def _mha_kernel(x_ref, wqkv_ref, bqkv_ref, wout_ref, bout_ref, o_ref):
    """Whole-batch multihead attention in one invocation.

    x_ref:    (B*S, INPUT_DIM)
    wqkv_ref: (INPUT_DIM, 3*D_MODEL)  grouped [Q | K | V], scale folded into Q
    bqkv_ref: (1, 3*D_MODEL)          same grouping / scale
    wout_ref: (D_MODEL, D_MODEL)      original (unsplit) output projection
    bout_ref: (1, D_MODEL)
    o_ref:    (B*S, D_MODEL)
    """
    # One MXU pass for the whole batch's qkv projection.
    qkv = jnp.dot(x_ref[...], wqkv_ref[...], preferred_element_type=jnp.float32)
    qkv = qkv + bqkv_ref[...]                              # (B*S, 3*D_MODEL)

    # Grouped layout -> three wide contiguous lane slices.
    q = qkv[:, 0 * D_MODEL:1 * D_MODEL]                    # already pre-scaled
    k = qkv[:, 1 * D_MODEL:2 * D_MODEL]
    v = qkv[:, 2 * D_MODEL:3 * D_MODEL]

    def to_heads(t):
        # (B*S, H*hd) -> (B*H, S, hd): one small lane->sublane relayout per
        # tensor, done once (replaces 4 serialized per-head lane slices).
        return (t.reshape(BATCH, SEQ, NUM_HEADS, HEAD_DIM)
                 .transpose(0, 2, 1, 3)
                 .reshape(BATCH * NUM_HEADS, SEQ, HEAD_DIM))

    qh = to_heads(q)
    kh = to_heads(k)
    vh = to_heads(v)

    # All heads at once: one batched score matmul, one softmax, one value
    # matmul (instead of 4 serialized copies of each).
    s = jnp.einsum("nqd,nkd->nqk", qh, kh,
                   preferred_element_type=jnp.float32)     # (B*H, S, S)
    s = s - jnp.max(s, axis=-1, keepdims=True)
    p = jnp.exp(s)
    p = p * pl.reciprocal(jnp.sum(p, axis=-1, keepdims=True), approx=True)

    vals = jnp.einsum("nqk,nkd->nqd", p, vh,
                      preferred_element_type=jnp.float32)  # (B*H, S, hd)

    # Heads back into one lane-dense (B*S, D_MODEL) slab, then a single
    # output-projection matmul against the unsplit wout.
    vals = (vals.reshape(BATCH, NUM_HEADS, SEQ, HEAD_DIM)
                .transpose(0, 2, 1, 3)
                .reshape(BATCH * SEQ, D_MODEL))
    out = jnp.dot(vals, wout_ref[...], preferred_element_type=jnp.float32)
    out = out + bout_ref[...]
    o_ref[...] = out.astype(o_ref.dtype)


def prepare_params(wqkv, bqkv, wout, bout):
    """One-time host-side layout plumbing (free; not part of the kernel).

    * Permute qkv columns: per-head interleaved [q0 k0 v0 | q1 k1 v1 | ...]
      (the module's reshape+chunk layout) -> grouped [Q | K | V] with heads
      consecutive inside each group.
    * Fold 1/sqrt(HEAD_DIM) into the Q columns of both weight and bias.
    * wout stays unsplit (single out-projection matmul in the kernel).
    """
    hd = HEAD_DIM
    q_idx = [h * 3 * hd + j for h in range(NUM_HEADS) for j in range(hd)]
    k_idx = [h * 3 * hd + hd + j for h in range(NUM_HEADS) for j in range(hd)]
    v_idx = [h * 3 * hd + 2 * hd + j for h in range(NUM_HEADS) for j in range(hd)]
    perm = jnp.array(q_idx + k_idx + v_idx, dtype=jnp.int32)

    scale = 1.0 / math.sqrt(hd)
    col_scale = jnp.concatenate([
        jnp.full((D_MODEL,), scale, jnp.float32),
        jnp.ones((2 * D_MODEL,), jnp.float32),
    ])

    wqkv_g = wqkv[:, perm] * col_scale
    bqkv_g = bqkv[:, perm] * col_scale
    return wqkv_g, bqkv_g, wout, bout


def multihead_attention(x, wqkv_g, bqkv_g, wout, bout):
    """x: (B, S, INPUT_DIM) f32; params from prepare_params. -> (B, S, D_MODEL)."""
    B, S, Din = x.shape
    # Leading-dim merge is free XLA metadata in the wrapper (would be a
    # potential VMEM relayout inside the kernel).
    x2 = x.reshape(B * S, Din)
    out2 = pl.pallas_call(
        _mha_kernel,
        out_shape=jax.ShapeDtypeStruct((B * S, D_MODEL), x.dtype),
        in_specs=[pl.BlockSpec(memory_space=pltpu.MemorySpace.VMEM)] * 5,
        out_specs=pl.BlockSpec(memory_space=pltpu.MemorySpace.VMEM),
    )(x2, wqkv_g, bqkv_g, wout, bout)
    return out2.reshape(B, S, D_MODEL)


def _reference(x, wqkv, bqkv, wout, bout):
    """Pure-JAX reference mirroring the PyTorch forward (mask=None),
    using the ORIGINAL (interleaved, unscaled) parameter layout."""
    B, S, _ = x.shape
    qkv = x @ wqkv + bqkv[0]                                   # (B, S, 3*D_MODEL)
    qkv = qkv.reshape(B, S, NUM_HEADS, 3 * HEAD_DIM).transpose(0, 2, 1, 3)
    q, k, v = jnp.split(qkv, 3, axis=-1)
    scores = jnp.einsum("bhqd,bhkd->bhqk", q, k) / math.sqrt(HEAD_DIM)
    attn = jax.nn.softmax(scores, axis=-1)
    vals = jnp.einsum("bhqk,bhkd->bhqd", attn, v)
    vals = vals.transpose(0, 2, 1, 3).reshape(B, S, D_MODEL)
    return vals @ wout + bout[0]


if __name__ == "__main__":
    key = jax.random.PRNGKey(0)
    kx, k1, k2, k3, k4 = jax.random.split(key, 5)

    # Deterministic parameter init (PyTorch Linear-style uniform bounds),
    # stored pre-transposed as (in_features, out_features), interleaved layout.
    bound_qkv = 1.0 / math.sqrt(INPUT_DIM)
    wqkv = jax.random.uniform(k1, (INPUT_DIM, 3 * D_MODEL), jnp.float32,
                              -bound_qkv, bound_qkv)
    bqkv = jax.random.uniform(k2, (1, 3 * D_MODEL), jnp.float32,
                              -bound_qkv, bound_qkv)
    bound_out = 1.0 / math.sqrt(D_MODEL)
    wout = jax.random.uniform(k3, (D_MODEL, D_MODEL), jnp.float32,
                              -bound_out, bound_out)
    bout = jax.random.uniform(k4, (1, D_MODEL), jnp.float32,
                              -bound_out, bound_out)

    x = jax.random.normal(kx, (BATCH, SEQ, INPUT_DIM), jnp.float32)

    # One-time host-side parameter prep, then the kernel.
    wqkv_g, bqkv_g, wout_p, bout_p = prepare_params(wqkv, bqkv, wout, bout)
    out = multihead_attention(x, wqkv_g, bqkv_g, wout_p, bout_p)
    out = jax.block_until_ready(out)

    ref = _reference(x, wqkv, bqkv, wout, bout)
    assert out.shape == (BATCH, SEQ, D_MODEL)
    # Tolerance loosened for pl.reciprocal(approx=True) in the softmax denom.
    assert jnp.allclose(out, ref, atol=2e-3, rtol=2e-3), "mismatch vs reference"

    print("KERNEL_OK")
</pallas_src>

<mosaic_0001>
module attributes {stable_mosaic.version = 11 : i64} {
  func.func @_mha_kernel(%arg0: memref<16x16xf32, #tpu.memory_space<vmem>>, %arg1: memref<16x96xf32, #tpu.memory_space<vmem>>, %arg2: memref<1x96xf32, #tpu.memory_space<vmem>>, %arg3: memref<32x32xf32, #tpu.memory_space<vmem>>, %arg4: memref<1x32xf32, #tpu.memory_space<vmem>>, %arg5: memref<16x32xf32, #tpu.memory_space<vmem>>) attributes {dimension_semantics = [], scalar_prefetch = 0 : i64, scratch_operands = 0 : i64, tpu.core_type = #tpu.core_type<tc>} {
    %c0 = arith.constant 0 : index
    %c0_0 = arith.constant 0 : index
    %0 = vector.load %arg0[%c0, %c0_0] : memref<16x16xf32, #tpu.memory_space<vmem>>, vector<16x16xf32>
    %c0_1 = arith.constant 0 : index
    %c0_2 = arith.constant 0 : index
    %1 = vector.load %arg1[%c0_1, %c0_2] : memref<16x96xf32, #tpu.memory_space<vmem>>, vector<16x96xf32>
    %cst = arith.constant dense<0.000000e+00> : vector<16x96xf32>
    %2 = tpu.matmul %0, %1, %cst {dimension_numbers = #tpu.dot_dimension_numbers<[1], [0], [0], [1], [0, 0, 1, 1], [], []>} : vector<16x16xf32>, vector<16x96xf32>, vector<16x96xf32> -> vector<16x96xf32>
    %c0_3 = arith.constant 0 : index
    %c0_4 = arith.constant 0 : index
    %3 = vector.load %arg2[%c0_3, %c0_4] : memref<1x96xf32, #tpu.memory_space<vmem>>, vector<1x96xf32>
    %4 = vector.broadcast %3 : vector<1x96xf32> to vector<16x96xf32>
    %5 = arith.addf %2, %4 : vector<16x96xf32>
    %6 = vector.extract_strided_slice %5 {offsets = [0, 0], sizes = [16, 32], strides = [1, 1]} : vector<16x96xf32> to vector<16x32xf32>
    %7 = vector.extract_strided_slice %5 {offsets = [0, 32], sizes = [16, 32], strides = [1, 1]} : vector<16x96xf32> to vector<16x32xf32>
    %8 = vector.extract_strided_slice %5 {offsets = [0, 64], sizes = [16, 32], strides = [1, 1]} : vector<16x96xf32> to vector<16x32xf32>
    %9 = vector.shape_cast %6 : vector<16x32xf32> to vector<2x8x4x8xf32>
    %10 = tpu.transpose %9, [0, 2, 1, 3] : vector<2x8x4x8xf32> -> vector<2x4x8x8xf32>
    %11 = vector.shape_cast %10 : vector<2x4x8x8xf32> to vector<8x8x8xf32>
    %12 = vector.shape_cast %7 : vector<16x32xf32> to vector<2x8x4x8xf32>
    %13 = tpu.transpose %12, [0, 2, 1, 3] : vector<2x8x4x8xf32> -> vector<2x4x8x8xf32>
    %14 = vector.shape_cast %13 : vector<2x4x8x8xf32> to vector<8x8x8xf32>
    %15 = vector.shape_cast %8 : vector<16x32xf32> to vector<2x8x4x8xf32>
    %16 = tpu.transpose %15, [0, 2, 1, 3] : vector<2x8x4x8xf32> -> vector<2x4x8x8xf32>
    %17 = vector.shape_cast %16 : vector<2x4x8x8xf32> to vector<8x8x8xf32>
    "tpu.trace_start"() <{level = 10 : i32, message = "nqd,nkd->nqk"}> : () -> ()
    %cst_5 = arith.constant dense<0.000000e+00> : vector<8x8x8xf32>
    %18 = tpu.matmul %11, %14, %cst_5 {dimension_numbers = #tpu.dot_dimension_numbers<[2], [2], [1], [1], [0, 0, 0, 1, 1, 1], [0], [0]>} : vector<8x8x8xf32>, vector<8x8x8xf32>, vector<8x8x8xf32> -> vector<8x8x8xf32>
    "tpu.trace_stop"() : () -> ()
    %cst_6 = arith.constant dense<0xFF800000> : vector<8x8xf32>
    %19 = vector.multi_reduction <maximumf>, %18, %cst_6 [2] : vector<8x8x8xf32> to vector<8x8xf32>
    %20 = vector.shape_cast %19 : vector<8x8xf32> to vector<8x8x1xf32>
    %21 = vector.broadcast %20 : vector<8x8x1xf32> to vector<8x8x8xf32>
    %22 = arith.subf %18, %21 : vector<8x8x8xf32>
    %23 = math.exp %22 : vector<8x8x8xf32>
    %cst_7 = arith.constant dense<0.000000e+00> : vector<8x8xf32>
    %24 = vector.multi_reduction <add>, %23, %cst_7 [2] : vector<8x8x8xf32> to vector<8x8xf32>
    %25 = vector.shape_cast %24 : vector<8x8xf32> to vector<8x8x1xf32>
    %26 = tpu.reciprocal %25 {approx = true} : vector<8x8x1xf32> -> vector<8x8x1xf32>
    %27 = vector.broadcast %26 : vector<8x8x1xf32> to vector<8x8x8xf32>
    %28 = arith.mulf %23, %27 : vector<8x8x8xf32>
    "tpu.trace_start"() <{level = 10 : i32, message = "nqk,nkd->nqd"}> : () -> ()
    %cst_8 = arith.constant dense<0.000000e+00> : vector<8x8x8xf32>
    %29 = tpu.matmul %28, %17, %cst_8 {dimension_numbers = #tpu.dot_dimension_numbers<[2], [1], [1], [2], [0, 0, 0, 1, 1, 2], [0], [0]>} : vector<8x8x8xf32>, vector<8x8x8xf32>, vector<8x8x8xf32> -> vector<8x8x8xf32>
    "tpu.trace_stop"() : () -> ()
    %30 = vector.shape_cast %29 : vector<8x8x8xf32> to vector<2x4x8x8xf32>
    %31 = tpu.transpose %30, [0, 2, 1, 3] : vector<2x4x8x8xf32> -> vector<2x8x4x8xf32>
    %32 = vector.shape_cast %31 : vector<2x8x4x8xf32> to vector<16x32xf32>
    %c0_9 = arith.constant 0 : index
    %c0_10 = arith.constant 0 : index
    %33 = vector.load %arg3[%c0_9, %c0_10] : memref<32x32xf32, #tpu.memory_space<vmem>>, vector<32x32xf32>
    %cst_11 = arith.constant dense<0.000000e+00> : vector<16x32xf32>
    %34 = tpu.matmul %32, %33, %cst_11 {dimension_numbers = #tpu.dot_dimension_numbers<[1], [0], [0], [1], [0, 0, 1, 1], [], []>} : vector<16x32xf32>, vector<32x32xf32>, vector<16x32xf32> -> vector<16x32xf32>
    %c0_12 = arith.constant 0 : index
    %c0_13 = arith.constant 0 : index
    %35 = vector.load %arg4[%c0_12, %c0_13] : memref<1x32xf32, #tpu.memory_space<vmem>>, vector<1x32xf32>
    %36 = vector.broadcast %35 : vector<1x32xf32> to vector<16x32xf32>
    %37 = arith.addf %34, %36 : vector<16x32xf32>
    %c0_14 = arith.constant 0 : index
    %c0_15 = arith.constant 0 : index
    %38 = vector.load %arg5[%c0_14, %c0_15] : memref<16x32xf32, #tpu.memory_space<vmem>>, vector<16x32xf32>
    tpu.vector_store %arg5[%c0_14, %c0_15], %37 {strides = array<i32>} : memref<16x32xf32, #tpu.memory_space<vmem>>, vector<16x32xf32>,
    return
  }
}

</mosaic_0001>

<bundles_post_ra>
// kernel: tpu_custom_call.1
= control target key start
LH: loop header
LB: loop body
LE: loop exit
PB: predicated region body
PF: predicated region fallthrough
CT: control target
= control target key end

     0   :  { %10 = vsyncpa [#allocation3], 0  ;;  %s2407_s0 = inlined_call_operand.hbm [shape: f32[16,16], index: 0, kind: input, shape index: {}]   ;;  %s2408_s1 = inlined_call_operand.hbm [shape: f32[16,96], index: 1, kind: input, shape index: {}]   ;;  %s2409_s2 = inlined_call_operand.vmem [shape: f32[1,96], index: 2, kind: input, shape index: {}]   ;;  %s2410_s3 = inlined_call_operand.hbm [shape: f32[32,32], index: 3, kind: input, shape index: {}]   ;;  %s2411_s4 = inlined_call_operand.vmem [shape: f32[1,32], index: 4, kind: input, shape index: {}]   ;;  %s2412_s5 = inlined_call_operand.hbm [shape: f32[16,32], index: 5, kind: output, shape index: {}]  }
   0x1   :  { %11 = vsyncpa [#allocation6], 0 }
   0x2   :  { %12 = vsyncpa [#allocation4], 0  ;;  %s30_s20 = sshll.u32 %s2408_s1, 4  ;;  %s1826_s21 = smov [#allocation5]   ;;  %s31_s20 = int_to_ptr.hbm [resolvable:$true] %s30_s20 }
   0x3   :  { %s32_s22 = sshll.u32 %s1826_s21, 4  ;;  %s17_s25 = sshll.u32 %s2407_s0, 4  ;;  %s33_s22 = int_to_ptr.vmem [resolvable:$true] %s32_s22  ;;  %s18_s25 = int_to_ptr.hbm [resolvable:$true] %s17_s25 }
   0x4   :  { %s1827_s26 = smov 128   ;;  %s1828_s27 = smov 8  }
   0x5   :  { %38 = dma.hbm_to_vmem [thread:$0]  %s31_s20, 256, %s33_s22, [#allocation6], %s1827_s26, %s1827_s26, %s1828_s27  }
   0x6   :  { %s1829_s28 = smov [#allocation2]   ;;  %s45_s1 = sshll.u32 %s2410_s3, 4  ;;  %s46_s1 = int_to_ptr.hbm [resolvable:$true] %s45_s1 }
   0x7   :  { %s19_s29 = sshll.u32 %s1829_s28, 4  ;;  %s1830_s0 = smov [#allocation7]   ;;  %s20_s29 = int_to_ptr.vmem [resolvable:$true] %s19_s29 }
   0x8   :  { %25 = dma.hbm_to_vmem [thread:$0]  %s18_s25, 256, %s20_s29, [#allocation3], %s1827_s26, %s1827_s26, %s1828_s27  }
   0x9   :  { %s47_s7 = sshll.u32 %s1830_s0, 4  ;;  %s48_s7 = int_to_ptr.vmem [resolvable:$true] %s47_s7 }
   0xa   :  { %53 = dma.hbm_to_vmem [thread:$0]  %s46_s1, 512, %s48_s7, [#allocation6], %s1827_s26, %s1827_s26, %s1828_s27  }
   0xb   :  { %1820 = dma.done.wait [#allocation3], 256  }
   0xc   :  { %1821 = vsyncadd [#allocation3], 4294967040 }
   0xd   :  { %1822 = dma.done.wait [#allocation6], 768  }
   0xe   :  { %1823 = vsyncadd [#allocation6], 4294966528  ;;  %v71_v0 = vld [vmem:[#allocation5 + $0x8] sm:$0xff]  ;;  %v70_v1 = vld [vmem:[#allocation5] sm:$0xff]  ;;  %vm76_vm0 = vcmask 130048   ;;  %s1831_s9 = smov 120  }
   0xf   :  { %97 = vmatpush.msra.mxu0 %v71_v0  ;;  %v68_v2 = vld [vmem:[#allocation2] sm:$0xff]  ;;  %v69_v3 = vld [vmem:[#allocation2 + $0x8] sm:$0xff]  ;;  %s1832_s10 = smov 112   ;;  %s1833_s11 = smov 104   ;;  %v1835_v11 = vmov 1983009808  }
  0x10   :  { %v1690_v4 = vld [vmem:[%s2409_s2] ss:$0 sm:$0xff]  ;;  %s1834_s2 = smov 96   ;;  %v132_v12 = vunpack.c.l.s4 %v1835_v11  ;;  %vm127_vm1 = vcmask 1047556   ;;  %v1836_v26 = vmov 1934713408  }
  0x11   :  { %98 = vmatpush.msra.mxu0 %v70_v1  ;;  %v156_v27 = vunpack.c.l.s4 %v1836_v26  ;;  %s1837_s12 = smov 64   ;;  %vm835_vm2 = vcmask 64512   ;;  %s1838_s13 = smov 16   ;;  %vm1564_vm3 = vcmask 195584   ;;  %vm1575_vm4 = vcmask 261120  }
  0x12   :  { %1627 = vmatmul.msk.f32.vlgmr.msra.gmra.mxu0 %vm76_vm0, %v68_v2  ;;  %v1920_v17 = vunpack.c.0.s8 %v132_v12  ;;  %s1839_s14 = smov 24   ;;  %s1840_s17 = smov [#allocation8]  }
  0x13   :  { %v1942_v34 = vunpack.c.0.s8 %v156_v27  ;;  %s1611_s18 = sshll.u32 %s1840_s17, 4  ;;  %s1613_s21 = sshll.u32 %s2412_s5, 4  ;;  %s1612_s18 = int_to_ptr.vmem [resolvable:$true] %s1611_s18  ;;  %s1614_s21 = int_to_ptr.hbm [resolvable:$true] %s1613_s21 }
  0x1a   :  { %1628 = vmatmul.msk.f32.gmra.mxu0 %vm76_vm0, %v69_v3 }
  0x8f   :  { %v100_v5 = vpop.f32.mrf.mxu0 }
  0x90   :  { %v1894_v6 = vadd.f32 %v1690_v4, %v100_v5 }
  0x92   :  { %108 = vrot.lane.b32.xlu1 %v1894_v6, %s1831_s9  ;;  %114 = vrot.lane.b32.xlu0 %v1894_v6, %s1832_s10  ;;  %v129_v20 = vrot.slane %v1894_v6, 4 }
  0x97   :  { %v103_v7 = vpop.f32.mrf.mxu0 }
  0x98   :  { %v1898_v8 = vadd.f32 %v1690_v4, %v103_v7 }
  0x9a   :  { %116 = vrot.lane.b32.xlu2 %v1898_v8, %s1832_s10  ;;  %110 = vrot.lane.b32.xlu1 %v1898_v8, %s1831_s9  ;;  %v185_v14 = vrot.slane %v1898_v8, 4 }
  0x9b   :  { %120 = vrot.lane.b32.xlu0 %v1894_v6, %s1833_s11 }
  0xa2   :  { %347 = vrot.lane.b32.xlu1 %v1894_v6, %s1834_s2  ;;  %122 = vrot.lane.b32.xlu2 %v1898_v8, %s1833_s11 }
  0xaa   :  { %349 = vrot.lane.b32.xlu1 %v1898_v8, %s1834_s2 }
  0xf4   :  { %v1908_v9 = vpop.permute.xlu2 %116 }
  0xf5   :  { %v183_v13 = vrot.slane %v1908_v9, 4  ;;  %v186_v19 = vsel %vm127_vm1, %v1908_v9, %v185_v14 }
  0xf6   :  { %v194_v24 = vperm.slane %v186_v19, %v1920_v17 }
  0xf7   :  { %v184_v21 = vsel %vm127_vm1, %v183_v13, %v1898_v8 }
  0xf8   :  { %v190_v28 = vperm.slane %v184_v21, %v1920_v17  ;;  %v221_v33 = vrot.slane %v194_v24, 4 }
  0xfa   :  { %v209_v38 = vrot.slane %v190_v28, 4 }
  0xfc   :  { %v1910_v10 = vpop.permute.xlu2 %122 }
  0xfd   :  { %361 = vrot.lane.b32.xlu1 %v1910_v10, %s1834_s2  ;;  %v195_v25 = vrot.slane %v1910_v10, 4 }
 0x104   :  { %v1916_v15 = vpop.permute.xlu1 %108  ;;  %v1918_v16 = vpop.permute.xlu0 %114 }
 0x105   :  { %v126_v18 = vrot.slane %v1918_v16, 4  ;;  %355 = vrot.lane.b32.xlu0 %v1918_v16, %s1834_s2  ;;  %v130_v23 = vsel %vm127_vm1, %v1918_v16, %v129_v20  ;;  %v141_v31 = vrot.slane %v1916_v15, 4  ;;  %v1670_v13 = vpack.i.bf16 %v1916_v15, %v1894_v6 }
 0x106   :  { %v138_v30 = vperm.slane %v130_v23, %v1920_v17 }
 0x107   :  { %v128_v22 = vsel %vm127_vm1, %v126_v18, %v1894_v6 }
 0x108   :  { %v134_v29 = vperm.slane %v128_v22, %v1920_v17  ;;  %v165_v43 = vrot.slane %v138_v30, 4 }
 0x10a   :  { %v153_v42 = vrot.slane %v134_v29, 4 }
 0x10c   :  { %v1940_v32 = vpop.permute.xlu1 %110 }
 0x10d   :  { %v196_v35 = vsel %vm127_vm1, %v195_v25, %v1940_v32  ;;  %v197_v36 = vrot.slane %v1940_v32, 4  ;;  %v1947_v37 = vpop.permute.xlu0 %120  ;;  %351 = vrot.lane.b32.xlu0 %v1916_v15, %s1834_s2 }
 0x10e   :  { %v202_v39 = vperm.slane %v196_v35, %v1920_v17  ;;  %v139_v40 = vrot.slane %v1947_v37, 4  ;;  %v142_v41 = vsel %vm127_vm1, %v1947_v37, %v141_v31  ;;  %359 = vrot.lane.b32.xlu2 %v1947_v37, %s1834_s2 }
 0x10f   :  { %v198_v44 = vsel %vm127_vm1, %v1910_v10, %v197_v36  ;;  %v150_v45 = vperm.slane %v142_v41, %v1920_v17 }
 0x110   :  { %v206_v46 = vperm.slane %v198_v44, %v1920_v17  ;;  %v207_v47 = vrot.slane %v202_v39, 4  ;;  %v210_v48 = vsel %vm127_vm1, %v202_v39, %v209_v38  ;;  %v140_v49 = vsel %vm127_vm1, %v139_v40, %v1916_v15 }
 0x111   :  { %v218_v50 = vperm.slane %v210_v48, %v1942_v34  ;;  %v146_v51 = vperm.slane %v140_v49, %v1920_v17  ;;  %v163_v52 = vrot.slane %v150_v45, 4  ;;  %v166_v53 = vsel %vm127_vm1, %v150_v45, %v165_v43 }
 0x112   :  { %v208_v54 = vsel %vm127_vm1, %v207_v47, %v190_v28  ;;  %v219_v55 = vrot.slane %v206_v46, 4  ;;  %v222_v56 = vsel %vm127_vm1, %v206_v46, %v221_v33  ;;  %v174_v57 = vperm.slane %v166_v53, %v1942_v34 }
 0x113   :  { %v214_v58 = vperm.slane %v208_v54, %v1942_v34  ;;  %v230_v59 = vperm.slane %v222_v56, %v1942_v34  ;;  %v233_v60 = vrot.slane %v218_v50, 4  ;;  %v151_v61 = vrot.slane %v146_v51, 4 }
 0x114   :  { %v220_v62 = vsel %vm127_vm1, %v219_v55, %v194_v24  ;;  %v154_v63 = vsel %vm127_vm1, %v146_v51, %v153_v42  ;;  %v164_v0 = vsel %vm127_vm1, %v163_v52, %v138_v30  ;;  %v181_v1 = vrot.slane %v174_v57, 4 }
 0x115   :  { %v226_v2 = vperm.slane %v220_v62, %v1942_v34  ;;  %v231_v3 = vrot.slane %v214_v58, 4  ;;  %v234_v4 = vsel %vm127_vm1, 0.0, %v233_v60  ;;  %v237_v5 = vrot.slane %v230_v59, 4  ;;  %357 = vrot.lane.b32.xlu0 %v1908_v9, %s1834_s2 }
 0x116   :  { %v152_v7 = vsel %vm127_vm1, %v151_v61, %v134_v29  ;;  %v162_v11 = vperm.slane %v154_v63, %v1942_v34  ;;  %v170_v12 = vperm.slane %v164_v0, %v1942_v34  ;;  %353 = vrot.lane.b32.xlu2 %v1940_v32, %s1834_s2  ;;  %v298_v18 = vrot.slane %v234_v4, 4 }
 0x117   :  { %v238_v14 = vsel %vm127_vm1, 0.0, %v237_v5  ;;  %v158_v19 = vperm.slane %v152_v7, %v1942_v34  ;;  %v182_v20 = vsel %vm127_vm1, 0.0, %v181_v1  ;;  %v232_v27 = vsel %vm127_vm1, 0.0, %v231_v3 }
 0x118   :  { %v309_v21 = vrot.slane %v238_v14, 4  ;;  %v177_v22 = vrot.slane %v162_v11, 4  ;;  %v179_v23 = vrot.slane %v170_v12, 4  ;;  %v255_v24 = vrot.slane %v182_v20, 4 }
 0x119   :  { %v175_v25 = vrot.slane %v158_v19, 4  ;;  %v250_v26 = vsel %vm127_vm1, %v181_v1, %v170_v12  ;;  %v235_v6 = vrot.slane %v226_v2, 4  ;;  %v293_v41 = vsel %vm127_vm1, %v233_v60, %v214_v58 }
 0x11a   :  { %v178_v15 = vsel %vm127_vm1, 0.0, %v177_v22  ;;  %v180_v28 = vsel %vm127_vm1, 0.0, %v179_v23  ;;  %v239_v29 = vsel %vm127_vm1, %v177_v22, %v158_v19  ;;  %v254_v30 = vperm.slane %v250_v26, %v1920_v17 }
 0x11b   :  { %v244_v31 = vrot.slane %v178_v15, 4  ;;  %v176_v33 = vsel %vm127_vm1, 0.0, %v175_v25  ;;  %v243_v35 = vperm.slane %v239_v29, %v1920_v17  ;;  %v256_v36 = vsel %vm127_vm1, %v255_v24, %v180_v28 }
 0x11c   :  { %v260_v38 = vperm.slane %v256_v36, %v1920_v17  ;;  %v275_v39 = vrot.slane %v254_v30, 4  ;;  %v236_v40 = vsel %vm127_vm1, 0.0, %v235_v6  ;;  %v297_v44 = vperm.slane %v293_v41, %v1920_v17 }
 0x11d   :  { %1671 = vrot.lane.b32.xlu0 %v1670_v13, %s1837_s12  ;;  %v245_v42 = vsel %vm127_vm1, %v244_v31, %v176_v33  ;;  %v263_v43 = vrot.slane %v243_v35, 4  ;;  %v299_v48 = vsel %vm127_vm1, %v298_v18, %v232_v27  ;;  %v304_v51 = vsel %vm127_vm1, %v237_v5, %v226_v2  ;;  %v348_v31 = vpop.permute.xlu1 %347 }
 0x11e   :  { %v249_v45 = vperm.slane %v245_v42, %v1920_v17  ;;  %v273_v46 = vrot.slane %v260_v38, 4  ;;  %v276_v47 = vsel %vm127_vm1, %v260_v38, %v275_v39  ;;  %v303_v50 = vperm.slane %v299_v48, %v1920_v17 }
 0x11f   :  { %v284_v49 = vperm.slane %v276_v47, %v1942_v34  ;;  %v310_v52 = vsel %vm127_vm1, %v309_v21, %v236_v40  ;;  %v308_v56 = vperm.slane %v304_v51, %v1920_v17  ;;  %v317_v62 = vrot.slane %v297_v44, 4 }
 0x120   :  { %v261_v53 = vrot.slane %v249_v45, 4  ;;  %v274_v54 = vsel %vm127_vm1, %v273_v46, %v254_v30  ;;  %v264_v55 = vsel %vm127_vm1, %v249_v45, %v263_v43  ;;  %v314_v60 = vperm.slane %v310_v52, %v1920_v17 }
 0x121   :  { %v280_v57 = vperm.slane %v274_v54, %v1942_v34  ;;  %v272_v58 = vperm.slane %v264_v55, %v1942_v34  ;;  %v289_v59 = vrot.slane %v284_v49, 4  ;;  %v329_v63 = vrot.slane %v308_v56, 4 }
 0x122   :  { %v262_v61 = vsel %vm127_vm1, %v261_v53, %v243_v35  ;;  %v315_v0 = vrot.slane %v303_v50, 4  ;;  %v318_v5 = vsel %vm127_vm1, %v303_v50, %v317_v62  ;;  %v327_v12 = vrot.slane %v314_v60, 4 }
 0x123   :  { %v268_v1 = vperm.slane %v262_v61, %v1942_v34  ;;  %v285_v2 = vrot.slane %v280_v57, 4  ;;  %v2020_v3 = vsel %vm127_vm1, %v289_v59, %v272_v58  ;;  %v291_v4 = vrot.slane %v272_v58, 4 }
 0x124   :  { %v330_v7 = vsel %vm127_vm1, %v314_v60, %v329_v63  ;;  %v316_v11 = vsel %vm127_vm1, %v315_v0, %v297_v44  ;;  %v326_v18 = vperm.slane %v318_v5, %v1942_v34  ;;  %v328_v22 = vsel %vm127_vm1, %v327_v12, %v308_v56 }
 0x125   :  { %v287_v13 = vrot.slane %v268_v1, 4  ;;  %v2026_v14 = vsel %vm127_vm1, %v285_v2, %v268_v1  ;;  %v338_v19 = vperm.slane %v330_v7, %v1942_v34  ;;  %v2031_v20 = vsel %vm127_vm1, %v284_v49, %v291_v4  ;;  %v350_v33 = vpop.permute.xlu1 %349 }
 0x126   :  { %v322_v21 = vperm.slane %v316_v11, %v1942_v34  ;;  %v345_v25 = vrot.slane %v326_v18, 4  ;;  %v334_v26 = vperm.slane %v328_v22, %v1942_v34  ;;  %v373_v40 = vrot.slane %v348_v31, 4 }
 0x127   :  { %v2036_v23 = vsel %vm127_vm1, %v280_v57, %v287_v13  ;;  %v343_v24 = vrot.slane %v338_v19, 4  ;;  %v429_v11 = vrot.slane %v350_v33, 4 }
 0x128   :  { %v341_v27 = vrot.slane %v322_v21, 4  ;;  %v339_v15 = vrot.slane %v334_v26, 4  ;;  %v2043_v28 = vsel %vm127_vm1, %v338_v19, %v345_v25 }
 0x129   :  { %v2040_v6 = vsel %vm127_vm1, %v343_v24, %v326_v18 }
 0x12a   :  { %v2046_v29 = vsel %vm127_vm1, %v334_v26, %v341_v27  ;;  %v2049_v30 = vsel %vm127_vm1, %v339_v15, %v322_v21 }
 0x168   :  { %v360_v35 = vpop.permute.xlu2 %359 }
 0x169   :  { %v383_v46 = vrot.slane %v360_v35, 4 }
 0x16f   :  { %v362_v39 = vpop.permute.xlu1 %361 }
 0x170   :  { %v439_v42 = vrot.slane %v362_v39, 4  ;;  %v354_v43 = vpop.permute.xlu2 %353 }
 0x171   :  { %v441_v47 = vrot.slane %v354_v43, 4 }
 0x172   :  { %v440_v49 = vsel %vm127_vm1, %v439_v42, %v354_v43 }
 0x173   :  { %v442_v55 = vsel %vm127_vm1, %v362_v39, %v441_v47  ;;  %v446_v56 = vperm.slane %v440_v49, %v1920_v17 }
 0x174   :  { %v450_v63 = vperm.slane %v442_v55, %v1920_v17 }
 0x175   :  { %v451_v12 = vrot.slane %v446_v56, 4 }
 0x176   :  { %v463_v25 = vrot.slane %v450_v63, 4 }
 0x177   :  { %v356_v36 = vpop.permute.xlu0 %355 }
 0x178   :  { %v371_v38 = vrot.slane %v356_v36, 4  ;;  %v374_v44 = vsel %vm127_vm1, %v356_v36, %v373_v40 }
 0x179   :  { %v382_v48 = vperm.slane %v374_v44, %v1920_v17 }
 0x17a   :  { %v372_v41 = vsel %vm127_vm1, %v371_v38, %v348_v31 }
 0x17b   :  { %v378_v45 = vperm.slane %v372_v41, %v1920_v17  ;;  %v409_v58 = vrot.slane %v382_v48, 4 }
 0x17d   :  { %v397_v53 = vrot.slane %v378_v45, 4 }
 0x17f   :  { %v352_v50 = vpop.permute.xlu0 %351 }
 0x180   :  { %v384_v51 = vsel %vm127_vm1, %v383_v46, %v352_v50  ;;  %v385_v52 = vrot.slane %v352_v50, 4 }
 0x181   :  { %v390_v54 = vperm.slane %v384_v51, %v1920_v17 }
 0x182   :  { %v386_v57 = vsel %vm127_vm1, %v360_v35, %v385_v52 }
 0x183   :  { %v394_v59 = vperm.slane %v386_v57, %v1920_v17  ;;  %v395_v60 = vrot.slane %v390_v54, 4  ;;  %v398_v61 = vsel %vm127_vm1, %v390_v54, %v397_v53 }
 0x184   :  { %v406_v62 = vperm.slane %v398_v61, %v1942_v34 }
 0x185   :  { %v396_v0 = vsel %vm127_vm1, %v395_v60, %v378_v45  ;;  %v407_v1 = vrot.slane %v394_v59, 4  ;;  %v410_v2 = vsel %vm127_vm1, %v394_v59, %v409_v58 }
 0x186   :  { %v402_v4 = vperm.slane %v396_v0, %v1942_v34  ;;  %v418_v5 = vperm.slane %v410_v2, %v1942_v34  ;;  %v421_v7 = vrot.slane %v406_v62, 4 }
 0x187   :  { %v408_v13 = vsel %vm127_vm1, %v407_v1, %v382_v48  ;;  %v358_v18 = vpop.permute.xlu0 %357 }
 0x188   :  { %v414_v19 = vperm.slane %v408_v13, %v1942_v34  ;;  %v419_v21 = vrot.slane %v402_v4, 4  ;;  %v422_v22 = vsel %vm127_vm1, 0.0, %v421_v7  ;;  %v425_v24 = vrot.slane %v418_v5, 4 }
 0x189   :  { %v488_v26 = vrot.slane %v422_v22, 4  ;;  %v427_v27 = vrot.slane %v358_v18, 4  ;;  %v430_v15 = vsel %vm127_vm1, %v358_v18, %v429_v11  ;;  %v483_v39 = vsel %vm127_vm1, %v421_v7, %v402_v4 }
 0x18a   :  { %v420_v31 = vsel %vm127_vm1, 0.0, %v419_v21  ;;  %v423_v35 = vrot.slane %v414_v19, 4  ;;  %v426_v36 = vsel %vm127_vm1, 0.0, %v425_v24  ;;  %v438_v38 = vperm.slane %v430_v15, %v1920_v17 }
 0x18b   :  { %v499_v40 = vrot.slane %v426_v36, 4  ;;  %v428_v41 = vsel %vm127_vm1, %v427_v27, %v350_v33  ;;  %v489_v42 = vsel %vm127_vm1, %v488_v26, %v420_v31  ;;  %v494_v49 = vsel %vm127_vm1, %v425_v24, %v414_v19 }
 0x18c   :  { %v434_v43 = vperm.slane %v428_v41, %v1920_v17  ;;  %v464_v44 = vsel %vm127_vm1, %v463_v25, %v438_v38  ;;  %v465_v45 = vrot.slane %v438_v38, 4  ;;  %v424_v46 = vsel %vm127_vm1, 0.0, %v423_v35 }
 0x18d   :  { %v470_v47 = vperm.slane %v464_v44, %v1942_v34  ;;  %v493_v48 = vperm.slane %v489_v42, %v1920_v17  ;;  %v500_v50 = vsel %vm127_vm1, %v499_v40, %v424_v46  ;;  %v487_v59 = vperm.slane %v483_v39, %v1920_v17 }
 0x18e   :  { %v452_v51 = vsel %vm127_vm1, %v451_v12, %v434_v43  ;;  %v453_v33 = vrot.slane %v434_v43, 4  ;;  %v466_v52 = vsel %vm127_vm1, %v450_v63, %v465_v45  ;;  %v504_v57 = vperm.slane %v500_v50, %v1920_v17 }
 0x18f   :  { %v458_v53 = vperm.slane %v452_v51, %v1942_v34  ;;  %v474_v54 = vperm.slane %v466_v52, %v1942_v34  ;;  %v479_v55 = vrot.slane %v470_v47, 4  ;;  %v498_v60 = vperm.slane %v494_v49, %v1920_v17 }
 0x190   :  { %v454_v58 = vsel %vm127_vm1, %v446_v56, %v453_v33  ;;  %v505_v61 = vrot.slane %v493_v48, 4  ;;  %v517_v4 = vrot.slane %v504_v57, 4  ;;  %v507_v25 = vrot.slane %v487_v59, 4 }
 0x191   :  { %v462_v62 = vperm.slane %v454_v58, %v1942_v34  ;;  %v481_v0 = vrot.slane %v474_v54, 4  ;;  %v475_v1 = vrot.slane %v458_v53, 4  ;;  %v480_v63 = vsel %vm127_vm1, 0.0, %v479_v55 }
 0x192   :  { %v506_v2 = vsel %vm127_vm1, %v505_v61, %v487_v59  ;;  %v518_v18 = vsel %vm127_vm1, %v517_v4, %v498_v60  ;;  %v519_v19 = vrot.slane %v498_v60, 4  ;;  %v508_v35 = vsel %vm127_vm1, %v493_v48, %v507_v25 }
 0x193   :  { %v477_v5 = vrot.slane %v462_v62, 4  ;;  %v482_v7 = vsel %vm127_vm1, 0.0, %v481_v0  ;;  %v548_v56 = vsel %vm127_vm1, %v481_v0, %v470_v47  ;;  %v512_v11 = vperm.slane %v506_v2, %v1942_v34 }
 0x194   :  { %v552_v12 = vperm.slane %v548_v56, %v1920_v17  ;;  %v553_v13 = vrot.slane %v482_v7, 4  ;;  %v524_v22 = vperm.slane %v518_v18, %v1942_v34  ;;  %v520_v27 = vsel %vm127_vm1, %v504_v57, %v519_v19 }
 0x195   :  { %v478_v21 = vsel %vm127_vm1, 0.0, %v477_v5  ;;  %v531_v24 = vrot.slane %v512_v11, 4  ;;  %v537_v15 = vsel %vm127_vm1, %v477_v5, %v458_v53  ;;  %v528_v36 = vperm.slane %v520_v27, %v1942_v34 }
 0x196   :  { %v554_v26 = vsel %vm127_vm1, %v553_v13, %v480_v63  ;;  %v529_v38 = vrot.slane %v524_v22, 4  ;;  %v516_v39 = vperm.slane %v508_v35, %v1942_v34  ;;  %v541_v40 = vperm.slane %v537_v15, %v1920_v17  ;;  %v2172_v15 = vpop.permute.xlu0 %1671 }
 0x197   :  { %v532_v31 = vsel %vm127_vm1, %v524_v22, %v531_v24  ;;  %v542_v41 = vrot.slane %v478_v21, 4  ;;  %v558_v42 = vperm.slane %v554_v26, %v1920_v17  ;;  %v533_v43 = vrot.slane %v528_v36, 4 }
 0x198   :  { %1631 = vmatpush.xpose.msk.msra.mxu3 %vm835_vm2, %v532_v31  ;;  %v530_v44 = vsel %vm127_vm1, %v529_v38, %v512_v11  ;;  %v476_v45 = vsel %vm127_vm1, 0.0, %v475_v1  ;;  %v573_v46 = vrot.slane %v552_v12, 4  ;;  %v535_v47 = vrot.slane %v516_v39, 4 }
 0x199   :  { %1629 = vmatpush.xpose.msk.msra.mxu1 %vm835_vm2, %v530_v44  ;;  %v543_v48 = vsel %vm127_vm1, %v542_v41, %v476_v45  ;;  %v561_v49 = vrot.slane %v541_v40, 4  ;;  %v571_v50 = vrot.slane %v558_v42, 4  ;;  %v534_v51 = vsel %vm127_vm1, %v533_v43, %v516_v39 }
 0x19a   :  { %v547_v33 = vperm.slane %v543_v48, %v1920_v17  ;;  %v574_v52 = vsel %vm127_vm1, %v558_v42, %v573_v46  ;;  %v536_v53 = vsel %vm127_vm1, %v528_v36, %v535_v47  ;;  %v1675_v25 = vpack.i.bf16 %v1947_v37, %v1918_v16 }
 0x19b   :  { %1632 = vmatmul.msk.f32.vlgmr.msra.gmra.mxu3 %vm835_vm2, %v2036_v23  ;;  %v582_v54 = vperm.slane %v574_v52, %v1942_v34  ;;  %v572_v55 = vsel %vm127_vm1, %v571_v50, %v552_v12  ;;  %v1685_v26 = vpack.i.bf16 %v1910_v10, %v1908_v9  ;;  %v1680_v27 = vpack.i.bf16 %v1940_v32, %v1898_v8 }
 0x19c   :  { %1633 = vmatpush.xpose.msk.msrb.mxu3 %vm835_vm2, %v534_v51  ;;  %v562_v57 = vsel %vm127_vm1, %v547_v33, %v561_v49  ;;  %v559_v58 = vrot.slane %v547_v33, 4  ;;  %v578_v59 = vperm.slane %v572_v55, %v1942_v34  ;;  %1630 = vmatmul.msk.f32.vlgmr.msra.gmra.mxu1 %vm835_vm2, %v2026_v14 }
 0x19d   :  { %1635 = vmatpush.xpose.msk.msrb.mxu1 %vm835_vm2, %v536_v53  ;;  %v570_v23 = vperm.slane %v562_v57, %v1942_v34  ;;  %v587_v60 = vrot.slane %v582_v54, 4 }
 0x19e   :  { %v560_v61 = vsel %vm127_vm1, %v559_v58, %v541_v40  ;;  %v583_v62 = vrot.slane %v578_v59, 4 }
 0x19f   :  { %v588_v0 = vsel %vm127_vm1, %v587_v60, %v570_v23  ;;  %v589_v1 = vrot.slane %v570_v23, 4  ;;  %v566_v63 = vperm.slane %v560_v61, %v1942_v34 }
 0x1a0   :  { %1641 = vmatpush.xpose.msk.msrb.mxu0 %vm835_vm2, %v588_v0 }
 0x1a1   :  { %v584_v2 = vsel %vm127_vm1, %v583_v62, %v566_v63  ;;  %v585_v4 = vrot.slane %v566_v63, 4  ;;  %v590_v5 = vsel %vm127_vm1, %v582_v54, %v589_v1 }
 0x1a2   :  { %1637 = vmatpush.xpose.msk.msra.mxu2 %vm835_vm2, %v584_v2  ;;  %1643 = vmatpush.xpose.msk.msra.mxu1 %vm835_vm2, %v590_v5  ;;  %v1674_v5 = vunpack.i.h.bf16 %v2172_v15 }
 0x1a3   :  { %1634 = vmatmul.msk.f32.vlgmr.msrb.gmra.mxu3 %vm835_vm2, %v2020_v3  ;;  %1642 = vmatmul.msk.f32.vlgmr.msrb.gmra.mxu0 %vm835_vm2, %v2040_v6  ;;  %v586_v14 = vsel %vm127_vm1, %v578_v59, %v585_v4 }
 0x1a4   :  { %1639 = vmatpush.xpose.msk.msra.mxu3 %vm835_vm2, %v586_v14  ;;  %1636 = vmatmul.msk.f32.vlgmr.msrb.gmra.mxu1 %vm835_vm2, %v2031_v20  ;;  %v1673_v14 = vunpack.i.l.bf16 %v2172_v15 }
 0x1a5   :  { %1638 = vmatmul.msk.f32.vlgmr.msra.gmra.mxu2 %vm835_vm2, %v2049_v30 }
 0x1ab   :  { %1640 = vmatmul.msk.f32.vlgmr.msra.gmra.mxu3 %vm835_vm2, %v2046_v29 }
 0x1ac   :  { %1644 = vmatmul.msk.f32.vlgmr.msra.gmra.mxu1 %vm835_vm2, %v2043_v28 }
 0x219   :  { %v859_v3 = vpop.f32.mrf.mxu1 }
 0x21a   :  { %v1044_v7 = vsel %vm835_vm2, %v859_v3, -inf }
 0x21b   :  { %1045 = vmax.xlane.f32.xlu2 %v1044_v7 }
 0x21e   :  { %v885_v6 = vpop.f32.mrf.mxu3 }
 0x21f   :  { %v1047_v56 = vsel %vm835_vm2, %v885_v6, -inf }
 0x220   :  { %1048 = vmax.xlane.f32.xlu0 %v1047_v56  ;;  %v1015_v11 = vpop.f32.mrf.mxu0 }
 0x221   :  { %v1062_v20 = vsel %vm835_vm2, %v1015_v11, -inf  ;;  %v937_v12 = vpop.f32.mrf.mxu1 }
 0x222   :  { %1063 = vmax.xlane.f32.xlu1 %v1062_v20  ;;  %v1053_v30 = vsel %vm835_vm2, %v937_v12, -inf  ;;  %v617_v20 = vrot.slane %v1673_v14, 4 }
 0x223   :  { %1054 = vmax.xlane.f32.xlu2 %v1053_v30 }
 0x226   :  { %v911_v29 = vpop.f32.mrf.mxu3 }
 0x227   :  { %v1050_v28 = vsel %vm835_vm2, %v911_v29, -inf }
 0x228   :  { %v963_v13 = vpop.f32.mrf.mxu2 }
 0x229   :  { %v1056_v18 = vsel %vm835_vm2, %v963_v13, -inf  ;;  %v1041_v22 = vpop.f32.mrf.mxu1 }
 0x22a   :  { %1051 = vmax.xlane.f32.xlu1 %v1050_v28  ;;  %v1065_v24 = vsel %vm835_vm2, %v1041_v22, -inf }
 0x22b   :  { %1057 = vmax.xlane.f32.xlu2 %v1056_v18 }
 0x22e   :  { %v989_v19 = vpop.f32.mrf.mxu3 }
 0x22f   :  { %v1059_v21 = vsel %vm835_vm2, %v989_v19, -inf }
 0x230   :  { %1060 = vmax.xlane.f32.xlu0 %v1059_v21 }
 0x233   :  { %1066 = vmax.xlane.f32.xlu2 %v1065_v24 }
 0x243   :  { %1676 = vrot.lane.b32.xlu1 %v1675_v25, %s1837_s12 }
 0x244   :  { %1686 = vrot.lane.b32.xlu0 %v1685_v26, %s1837_s12 }
 0x24b   :  { %1681 = vrot.lane.b32.xlu2 %v1680_v27, %s1837_s12 }
 0x28e   :  { %v1046_v31 = vpop.xlane.xlu2 %1045 }
 0x28f   :  { %v1068_v35 = vsub.f32 %v859_v3, %v1046_v31 }
 0x291   :  { %v1076_v36 = vmul.f32 1.442695, %v1068_v35 }
 0x293   :  { %v1049_v38 = vpop.xlane.xlu0 %1048  ;;  %1692 = vpow2.f32 %v1076_v36 }
 0x294   :  { %v1069_v39 = vsub.f32 %v885_v6, %v1049_v38 }
 0x295   :  { %v1064_v37 = vpop.xlane.xlu1 %1063 }
 0x296   :  { %v1078_v16 = vmul.f32 1.442695, %v1069_v39  ;;  %v1055_v9 = vpop.xlane.xlu2 %1054  ;;  %v1074_v40 = vsub.f32 %v1015_v11, %v1064_v37  ;;  %v629_v11 = vrot.slane %v1674_v5, 4 }
 0x297   :  { %v1071_v10 = vsub.f32 %v937_v12, %v1055_v9 }
 0x298   :  { %1694 = vpow2.f32 %v1078_v16  ;;  %v1088_v43 = vmul.f32 1.442695, %v1074_v40 }
 0x299   :  { %v2174_v41 = vpop.eup %1692  ;;  %v1082_v42 = vmul.f32 1.442695, %v1071_v10 }
 0x29a   :  { %v1092_v8 = vsel %vm835_vm2, %v2174_v41, 0.0 }
 0x29b   :  { %1696 = vpow2.f32 %v1082_v42  ;;  %1093 = vadd.xlane.f32.xlu1 %v1092_v8 }
 0x29c   :  { %1698 = vpow2.f32 %v1088_v43 }
 0x29d   :  { %v1052_v44 = vpop.xlane.xlu1 %1051 }
 0x29e   :  { %v2178_v32 = vpop.eup %1694  ;;  %v1070_v45 = vsub.f32 %v911_v29, %v1052_v44  ;;  %v1058_v47 = vpop.xlane.xlu2 %1057 }
 0x29f   :  { %v1095_v46 = vsel %vm835_vm2, %v2178_v32, 0.0  ;;  %v1072_v49 = vsub.f32 %v963_v13, %v1058_v47 }
 0x2a0   :  { %1096 = vadd.xlane.f32.xlu0 %v1095_v46  ;;  %v1080_v48 = vmul.f32 1.442695, %v1070_v45 }
 0x2a1   :  { %v2182_v50 = vpop.eup %1696  ;;  %v1084_v51 = vmul.f32 1.442695, %v1072_v49 }
 0x2a2   :  { %1700 = vpow2.f32 %v1080_v48  ;;  %v1101_v52 = vsel %vm835_vm2, %v2182_v50, 0.0  ;;  %v2186_v55 = vpop.eup %1698 }
 0x2a3   :  { %v1061_v33 = vpop.xlane.xlu0 %1060  ;;  %1702 = vpow2.f32 %v1084_v51  ;;  %1102 = vadd.xlane.f32.xlu1 %v1101_v52  ;;  %v1110_v62 = vsel %vm835_vm2, %v2186_v55, 0.0 }
 0x2a4   :  { %v1073_v53 = vsub.f32 %v989_v19, %v1061_v33 }
 0x2a6   :  { %v1086_v54 = vmul.f32 1.442695, %v1073_v53  ;;  %v1067_v57 = vpop.xlane.xlu2 %1066 }
 0x2a7   :  { %v1075_v59 = vsub.f32 %v1041_v22, %v1067_v57 }
 0x2a8   :  { %v2188_v58 = vpop.eup %1700  ;;  %1704 = vpow2.f32 %v1086_v54 }
 0x2a9   :  { %v1098_v23 = vsel %vm835_vm2, %v2188_v58, 0.0  ;;  %v2192_v60 = vpop.eup %1702  ;;  %v1090_v61 = vmul.f32 1.442695, %v1075_v59 }
 0x2aa   :  { %1099 = vadd.xlane.f32.xlu2 %v1098_v23  ;;  %v1104_v0 = vsel %vm835_vm2, %v2192_v60, 0.0 }
 0x2ab   :  { %1706 = vpow2.f32 %v1090_v61  ;;  %1111 = vadd.xlane.f32.xlu1 %v1110_v62  ;;  %1105 = vadd.xlane.f32.xlu0 %v1104_v0 }
 0x2ae   :  { %v2198_v1 = vpop.eup %1704  ;;  %v1682_v63 = vpop.permute.xlu2 %1681 }
 0x2af   :  { %v1107_v2 = vsel %vm835_vm2, %v2198_v1, 0.0  ;;  %v1684_v3 = vunpack.i.h.bf16 %v1682_v63  ;;  %v1683_v7 = vunpack.i.l.bf16 %v1682_v63 }
 0x2b1   :  { %v2202_v4 = vpop.eup %1706  ;;  %v685_v13 = vrot.slane %v1684_v3, 4  ;;  %v673_v28 = vrot.slane %v1683_v7, 4 }
 0x2b2   :  { %1108 = vadd.xlane.f32.xlu2 %v1107_v2  ;;  %v1113_v6 = vsel %vm835_vm2, %v2202_v4, 0.0 }
 0x2b3   :  { %1114 = vadd.xlane.f32.xlu0 %v1113_v6 }
 0x2b5   :  { %v1677_v56 = vpop.permute.xlu1 %1676 }
 0x2b6   :  { %v1679_v12 = vunpack.i.h.bf16 %v1677_v56  ;;  %v1678_v30 = vunpack.i.l.bf16 %v1677_v56  ;;  %v1687_v29 = vpop.permute.xlu0 %1686 }
 0x2b7   :  { %v1689_v18 = vunpack.i.h.bf16 %v1687_v29  ;;  %v1688_v19 = vunpack.i.l.bf16 %v1687_v29 }
 0x2b8   :  { %v627_v21 = vrot.slane %v1679_v12, 4  ;;  %v630_v22 = vsel %vm127_vm1, %v1679_v12, %v629_v11  ;;  %v615_v24 = vrot.slane %v1678_v30, 4  ;;  %v618_v25 = vsel %vm127_vm1, %v1678_v30, %v617_v20 }
 0x2b9   :  { %v638_v26 = vperm.slane %v630_v22, %v1920_v17  ;;  %v626_v27 = vperm.slane %v618_v25, %v1920_v17  ;;  %v683_v15 = vrot.slane %v1689_v18, 4  ;;  %v671_v31 = vrot.slane %v1688_v19, 4 }
 0x2ba   :  { %v628_v35 = vsel %vm127_vm1, %v627_v21, %v1674_v5  ;;  %v616_v36 = vsel %vm127_vm1, %v615_v24, %v1673_v14  ;;  %v674_v38 = vsel %vm127_vm1, %v1688_v19, %v673_v28  ;;  %v686_v39 = vsel %vm127_vm1, %v1689_v18, %v685_v13 }
 0x2bb   :  { %v634_v16 = vperm.slane %v628_v35, %v1920_v17  ;;  %v651_v37 = vrot.slane %v638_v26, 4  ;;  %v622_v9 = vperm.slane %v616_v36, %v1920_v17  ;;  %v653_v10 = vrot.slane %v626_v27, 4 }
 0x2bc   :  { %v672_v40 = vsel %vm127_vm1, %v671_v31, %v1683_v7  ;;  %v682_v42 = vperm.slane %v674_v38, %v1920_v17  ;;  %v684_v8 = vsel %vm127_vm1, %v683_v15, %v1684_v3  ;;  %v694_v43 = vperm.slane %v686_v39, %v1920_v17 }
 0x2bd   :  { %v639_v44 = vrot.slane %v634_v16, 4  ;;  %v641_v45 = vrot.slane %v622_v9, 4  ;;  %v652_v46 = vsel %vm127_vm1, %v651_v37, %v626_v27  ;;  %v654_v47 = vsel %vm127_vm1, %v638_v26, %v653_v10 }
 0x2be   :  { %v658_v48 = vperm.slane %v652_v46, %v1942_v34  ;;  %v662_v49 = vperm.slane %v654_v47, %v1942_v34  ;;  %v678_v51 = vperm.slane %v672_v40, %v1920_v17  ;;  %v690_v33 = vperm.slane %v684_v8, %v1920_v17 }
 0x2bf   :  { %v640_v52 = vsel %vm127_vm1, %v639_v44, %v622_v9  ;;  %v642_v53 = vsel %vm127_vm1, %v634_v16, %v641_v45  ;;  %v707_v54 = vrot.slane %v694_v43, 4  ;;  %v709_v57 = vrot.slane %v682_v42, 4 }
 0x2c0   :  { %v646_v59 = vperm.slane %v640_v52, %v1942_v34  ;;  %v650_v23 = vperm.slane %v642_v53, %v1942_v34  ;;  %v667_v61 = vrot.slane %v658_v48, 4  ;;  %v669_v62 = vrot.slane %v662_v49, 4 }
 0x2c1   :  { %v695_v0 = vrot.slane %v690_v33, 4  ;;  %v697_v63 = vrot.slane %v678_v51, 4  ;;  %v708_v2 = vsel %vm127_vm1, %v707_v54, %v682_v42  ;;  %v710_v5 = vsel %vm127_vm1, %v694_v43, %v709_v57 }
 0x2c2   :  { %v663_v14 = vrot.slane %v646_v59, 4  ;;  %v665_v3 = vrot.slane %v650_v23, 4  ;;  %v668_v7 = vsel %vm127_vm1, 0.0, %v667_v61  ;;  %v670_v6 = vsel %vm127_vm1, 0.0, %v669_v62 }
 0x2c3   :  { %v738_v56 = vsel %vm127_vm1, %v669_v62, %v658_v48  ;;  %v743_v11 = vrot.slane %v670_v6, 4  ;;  %v696_v20 = vsel %vm127_vm1, %v695_v0, %v678_v51  ;;  %v698_v12 = vsel %vm127_vm1, %v690_v33, %v697_v63 }
 0x2c4   :  { %v666_v30 = vsel %vm127_vm1, 0.0, %v665_v3  ;;  %v702_v29 = vperm.slane %v696_v20, %v1942_v34  ;;  %v706_v13 = vperm.slane %v698_v12, %v1942_v34  ;;  %v714_v28 = vperm.slane %v708_v2, %v1942_v34 }
 0x2c5   :  { %v732_v18 = vrot.slane %v666_v30, 4  ;;  %v718_v19 = vperm.slane %v710_v5, %v1942_v34  ;;  %v664_v21 = vsel %vm127_vm1, 0.0, %v663_v14  ;;  %v727_v22 = vsel %vm127_vm1, %v665_v3, %v646_v59 }
 0x2c6   :  { %v719_v24 = vrot.slane %v702_v29, 4  ;;  %v721_v25 = vrot.slane %v706_v13, 4  ;;  %v723_v26 = vrot.slane %v714_v28, 4  ;;  %v731_v27 = vperm.slane %v727_v22, %v1920_v17 }
 0x2c7   :  { %v725_v15 = vrot.slane %v718_v19, 4  ;;  %v733_v31 = vsel %vm127_vm1, %v732_v18, %v664_v21  ;;  %v742_v35 = vperm.slane %v738_v56, %v1920_v17  ;;  %v744_v36 = vsel %vm127_vm1, %v743_v11, %v668_v7 }
 0x2c8   :  { %v722_v38 = vsel %vm127_vm1, 0.0, %v721_v25  ;;  %v724_v39 = vsel %vm127_vm1, 0.0, %v723_v26  ;;  %v737_v16 = vperm.slane %v733_v31, %v1920_v17  ;;  %v748_v37 = vperm.slane %v744_v36, %v1920_v17 }
 0x2c9   :  { %v726_v9 = vsel %vm127_vm1, 0.0, %v725_v15  ;;  %v786_v10 = vrot.slane %v722_v38, 4  ;;  %v792_v40 = vsel %vm127_vm1, %v725_v15, %v714_v28  ;;  %v751_v42 = vrot.slane %v731_v27, 4 }
 0x2ca   :  { %v797_v8 = vrot.slane %v726_v9, 4  ;;  %v763_v43 = vrot.slane %v742_v35, 4  ;;  %v720_v44 = vsel %vm127_vm1, 0.0, %v719_v24  ;;  %v781_v45 = vsel %vm127_vm1, %v721_v25, %v702_v29 }
 0x2cb   :  { %v752_v46 = vsel %vm127_vm1, %v737_v16, %v751_v42  ;;  %v785_v47 = vperm.slane %v781_v45, %v1920_v17  ;;  %v787_v48 = vsel %vm127_vm1, %v786_v10, %v720_v44  ;;  %v796_v49 = vperm.slane %v792_v40, %v1920_v17 }
 0x2cc   :  { %v760_v51 = vperm.slane %v752_v46, %v1942_v34  ;;  %v764_v33 = vsel %vm127_vm1, %v748_v37, %v763_v43  ;;  %v791_v52 = vperm.slane %v787_v48, %v1920_v17  ;;  %v798_v53 = vsel %vm127_vm1, %v797_v8, %v724_v39 }
 0x2cd   :  { %v772_v54 = vperm.slane %v764_v33, %v1942_v34  ;;  %v802_v57 = vperm.slane %v798_v53, %v1920_v17  ;;  %v805_v59 = vrot.slane %v785_v47, 4  ;;  %v817_v23 = vrot.slane %v796_v49, 4 }
 0x2ce   :  { %v749_v61 = vrot.slane %v737_v16, 4  ;;  %v761_v62 = vrot.slane %v748_v37, 4  ;;  %v779_v0 = vrot.slane %v760_v51, 4  ;;  %v803_v63 = vrot.slane %v791_v52, 4 }
 0x2cf   :  { %v777_v2 = vrot.slane %v772_v54, 4  ;;  %v806_v5 = vsel %vm127_vm1, %v791_v52, %v805_v59  ;;  %v818_v14 = vsel %vm127_vm1, %v802_v57, %v817_v23  ;;  %v815_v3 = vrot.slane %v802_v57, 4 }
 0x2d0   :  { %v814_v7 = vperm.slane %v806_v5, %v1942_v34  ;;  %v826_v6 = vperm.slane %v818_v14, %v1942_v34  ;;  %v750_v56 = vsel %vm127_vm1, %v749_v61, %v731_v27  ;;  %v762_v11 = vsel %vm127_vm1, %v761_v62, %v742_v35 }
 0x2d1   :  { %v778_v20 = vsel %vm127_vm1, %v777_v2, %v760_v51  ;;  %v756_v12 = vperm.slane %v750_v56, %v1942_v34  ;;  %v768_v30 = vperm.slane %v762_v11, %v1942_v34  ;;  %v780_v29 = vsel %vm127_vm1, %v772_v54, %v779_v0 }
 0x2d2   :  { %1196 = vmatpush.msra.mxu0 %v778_v20  ;;  %v831_v13 = vrot.slane %v826_v6, 4  ;;  %1219 = vmatpush.msrb.mxu1 %v780_v29  ;;  %v804_v28 = vsel %vm127_vm1, %v803_v63, %v785_v47  ;;  %v816_v18 = vsel %vm127_vm1, %v815_v3, %v796_v49  ;;  %v833_v19 = vrot.slane %v814_v7, 4 }
 0x2d3   :  { %v773_v21 = vrot.slane %v768_v30, 4  ;;  %v775_v22 = vrot.slane %v756_v12, 4  ;;  %v810_v24 = vperm.slane %v804_v28, %v1942_v34  ;;  %v822_v25 = vperm.slane %v816_v18, %v1942_v34 }
 0x2d4   :  { %v832_v26 = vsel %vm127_vm1, %v831_v13, %v814_v7  ;;  %v834_v27 = vsel %vm127_vm1, %v826_v6, %v833_v19 }
 0x2d5   :  { %1288 = vmatpush.msrb.mxu0 %v832_v26  ;;  %v774_v15 = vsel %vm127_vm1, %v773_v21, %v756_v12  ;;  %v827_v31 = vrot.slane %v822_v25, 4  ;;  %1311 = vmatpush.msra.mxu1 %v834_v27  ;;  %v776_v35 = vsel %vm127_vm1, %v768_v30, %v775_v22  ;;  %v829_v36 = vrot.slane %v810_v24, 4 }
 0x2d6   :  { %1150 = vmatpush.msrb.mxu2 %v774_v15  ;;  %1173 = vmatpush.msrb.mxu3 %v776_v35 }
 0x2d7   :  { %v828_v38 = vsel %vm127_vm1, %v827_v31, %v810_v24  ;;  %v830_v39 = vsel %vm127_vm1, %v822_v25, %v829_v36 }
 0x2d8   :  { %1242 = vmatpush.msra.mxu2 %v828_v38  ;;  %1265 = vmatpush.msra.mxu3 %v830_v39 }
 0x30e   :  { %v1094_v16 = vpop.xlane.xlu1 %1093 }
 0x30f   :  { %1708 = vrcp.f32 %v1094_v16 }
 0x313   :  { %v1097_v37 = vpop.xlane.xlu0 %1096 }
 0x314   :  { %1710 = vrcp.f32 %v1097_v37 }
 0x315   :  { %v1709_v9 = vpop.eup %1708 }
 0x316   :  { %v1103_v10 = vpop.xlane.xlu1 %1102  ;;  %v1124_v40 = vmul.f32 %v1709_v9, %v2174_v41 }
 0x317   :  { %1712 = vrcp.f32 %v1103_v10 }
 0x318   :  { %1645 = vmatmul.msk.f32.vlgmr.msrb.gmra.mxu2 %vm835_vm2, %v1124_v40 }
 0x31a   :  { %v1711_v42 = vpop.eup %1710 }
 0x31b   :  { %v1125_v8 = vmul.f32 %v1711_v42, %v2178_v32 }
 0x31d   :  { %1646 = vmatmul.msk.f32.vlgmr.msrb.gmra.mxu3 %vm835_vm2, %v1125_v8  ;;  %v1100_v43 = vpop.xlane.xlu2 %1099  ;;  %v1713_v44 = vpop.eup %1712 }
 0x31e   :  { %1714 = vrcp.f32 %v1100_v43  ;;  %v1127_v45 = vmul.f32 %v1713_v44, %v2182_v50  ;;  %v1106_v46 = vpop.xlane.xlu0 %1105  ;;  %v1112_v47 = vpop.xlane.xlu1 %1111 }
 0x31f   :  { %1716 = vrcp.f32 %v1106_v46 }
 0x320   :  { %1648 = vmatmul.msk.f32.vlgmr.msrb.gmra.mxu1 %vm835_vm2, %v1127_v45  ;;  %1718 = vrcp.f32 %v1112_v47 }
 0x324   :  { %v1715_v48 = vpop.eup %1714 }
 0x325   :  { %v1126_v41 = vmul.f32 %v1715_v48, %v2188_v58  ;;  %v1109_v49 = vpop.xlane.xlu2 %1108  ;;  %v1717_v51 = vpop.eup %1716 }
 0x326   :  { %1720 = vrcp.f32 %v1109_v49  ;;  %v1115_v32 = vpop.xlane.xlu0 %1114  ;;  %v1128_v33 = vmul.f32 %v1717_v51, %v2192_v60  ;;  %v1719_v52 = vpop.eup %1718 }
 0x327   :  { %1647 = vmatmul.msk.f32.vlgmr.msra.gmra.mxu0 %vm835_vm2, %v1126_v41  ;;  %1722 = vrcp.f32 %v1115_v32  ;;  %v1130_v53 = vmul.f32 %v1719_v52, %v2186_v55 }
 0x328   :  { %1649 = vmatmul.msk.f32.vlgmr.msra.gmra.mxu2 %vm835_vm2, %v1128_v33 }
 0x32c   :  { %v1721_v50 = vpop.eup %1720 }
 0x32d   :  { %v1129_v54 = vmul.f32 %v1721_v50, %v2198_v1  ;;  %v1723_v57 = vpop.eup %1722 }
 0x32e   :  { %v1131_v58 = vmul.f32 %v1723_v57, %v2202_v4 }
 0x32f   :  { %1650 = vmatmul.msk.f32.vlgmr.msra.gmra.mxu3 %vm835_vm2, %v1129_v54  ;;  %1651 = vmatmul.msk.f32.vlgmr.msrb.gmra.mxu0 %vm835_vm2, %v1130_v53 }
 0x330   :  { %1652 = vmatmul.msk.f32.vlgmr.msra.gmra.mxu1 %vm835_vm2, %v1131_v58 }
 0x39b   :  { %v1152_v61 = vpop.f32.mrf.mxu2 }
 0x39c   :  { %v1318_v63 = vrot.slane %v1152_v61, 4 }
 0x39d   :  { %v1221_v59 = vpop.f32.mrf.mxu1 }
 0x39e   :  { %v1328_v60 = vrot.slane %v1221_v59, 4 }
 0x3a0   :  { %v1175_v23 = vpop.f32.mrf.mxu3 }
 0x3a1   :  { %v1330_v62 = vrot.slane %v1175_v23, 4  ;;  %v1329_v0 = vsel %vm127_vm1, %v1328_v60, %v1175_v23 }
 0x3a2   :  { %v1335_v4 = vperm.slane %v1329_v0, %v1920_v17 }
 0x3a3   :  { %v1331_v55 = vsel %vm127_vm1, %v1221_v59, %v1330_v62 }
 0x3a4   :  { %v1339_v1 = vperm.slane %v1331_v55, %v1920_v17  ;;  %v1198_v2 = vpop.f32.mrf.mxu0  ;;  %v1340_v56 = vrot.slane %v1335_v4, 4 }
 0x3a5   :  { %v1316_v14 = vrot.slane %v1198_v2, 4  ;;  %v1319_v3 = vsel %vm127_vm1, %v1198_v2, %v1318_v63 }
 0x3a6   :  { %v1352_v5 = vrot.slane %v1339_v1, 4  ;;  %v1327_v7 = vperm.slane %v1319_v3, %v1920_v17 }
 0x3a7   :  { %v1317_v6 = vsel %vm127_vm1, %v1316_v14, %v1152_v61 }
 0x3a8   :  { %v1323_v11 = vperm.slane %v1317_v6, %v1920_v17  ;;  %v1353_v20 = vsel %vm127_vm1, %v1352_v5, %v1327_v7  ;;  %v1354_v12 = vrot.slane %v1327_v7, 4 }
 0x3a9   :  { %v1359_v30 = vperm.slane %v1353_v20, %v1942_v34 }
 0x3aa   :  { %v1341_v29 = vsel %vm127_vm1, %v1340_v56, %v1323_v11  ;;  %v1342_v13 = vrot.slane %v1323_v11, 4  ;;  %v1355_v28 = vsel %vm127_vm1, %v1339_v1, %v1354_v12 }
 0x3ab   :  { %v1347_v18 = vperm.slane %v1341_v29, %v1942_v34  ;;  %v1363_v19 = vperm.slane %v1355_v28, %v1942_v34  ;;  %v1368_v21 = vrot.slane %v1359_v30, 4  ;;  %v1244_v27 = vpop.f32.mrf.mxu2 }
 0x3ac   :  { %v1343_v22 = vsel %vm127_vm1, %v1335_v4, %v1342_v13  ;;  %v1290_v24 = vpop.f32.mrf.mxu0  ;;  %v1374_v31 = vrot.slane %v1244_v27, 4 }
 0x3ad   :  { %v1351_v25 = vperm.slane %v1343_v22, %v1942_v34  ;;  %v1370_v26 = vrot.slane %v1363_v19, 4  ;;  %v1364_v15 = vrot.slane %v1347_v18, 4  ;;  %v1372_v35 = vrot.slane %v1290_v24, 4  ;;  %v1313_v36 = vpop.f32.mrf.mxu1 }
 0x3ae   :  { %v1369_v39 = vsel %vm127_vm1, 0.0, %v1368_v21  ;;  %v1375_v42 = vsel %vm127_vm1, %v1290_v24, %v1374_v31  ;;  %v1384_v45 = vrot.slane %v1313_v36, 4 }
 0x3af   :  { %v1366_v38 = vrot.slane %v1351_v25, 4  ;;  %v1371_v16 = vsel %vm127_vm1, 0.0, %v1370_v26  ;;  %v1439_v37 = vsel %vm127_vm1, %v1370_v26, %v1359_v30  ;;  %v1373_v40 = vsel %vm127_vm1, %v1372_v35, %v1244_v27 }
 0x3b0   :  { %v1443_v9 = vperm.slane %v1439_v37, %v1920_v17  ;;  %v1444_v10 = vrot.slane %v1371_v16, 4  ;;  %v1379_v43 = vperm.slane %v1373_v40, %v1920_v17  ;;  %v1383_v44 = vperm.slane %v1375_v42, %v1920_v17 }
 0x3b1   :  { %v1367_v8 = vsel %vm127_vm1, 0.0, %v1366_v38  ;;  %v1365_v48 = vsel %vm127_vm1, 0.0, %v1364_v15  ;;  %v1428_v41 = vsel %vm127_vm1, %v1366_v38, %v1347_v18 }
 0x3b2   :  { %v1445_v46 = vsel %vm127_vm1, %v1444_v10, %v1369_v39  ;;  %v1267_v47 = vpop.f32.mrf.mxu3  ;;  %v1433_v49 = vrot.slane %v1367_v8, 4  ;;  %v1398_v51 = vrot.slane %v1379_v43, 4  ;;  %v1464_v52 = vrot.slane %v1443_v9, 4 }
 0x3b3   :  { %v1385_v32 = vsel %vm127_vm1, %v1384_v45, %v1267_v47  ;;  %v1386_v33 = vrot.slane %v1267_v47, 4  ;;  %v1432_v53 = vperm.slane %v1428_v41, %v1920_v17  ;;  %v1449_v57 = vperm.slane %v1445_v46, %v1920_v17 }
 0x3b4   :  { %v1391_v50 = vperm.slane %v1385_v32, %v1920_v17  ;;  %v1434_v54 = vsel %vm127_vm1, %v1433_v49, %v1365_v48  ;;  %v1410_v58 = vrot.slane %v1383_v44, 4 }
 0x3b5   :  { %v1387_v59 = vsel %vm127_vm1, %v1313_v36, %v1386_v33  ;;  %v1438_v60 = vperm.slane %v1434_v54, %v1920_v17  ;;  %v1452_v0 = vrot.slane %v1432_v53, 4  ;;  %v1465_v63 = vsel %vm127_vm1, %v1449_v57, %v1464_v52 }
 0x3b6   :  { %v1395_v23 = vperm.slane %v1387_v59, %v1920_v17  ;;  %v1396_v61 = vrot.slane %v1391_v50, 4  ;;  %v1399_v62 = vsel %vm127_vm1, %v1391_v50, %v1398_v51  ;;  %v1462_v4 = vrot.slane %v1449_v57, 4 }
 0x3b7   :  { %v1407_v55 = vperm.slane %v1399_v62, %v1942_v34  ;;  %v1450_v1 = vrot.slane %v1438_v60, 4  ;;  %v1453_v3 = vsel %vm127_vm1, %v1438_v60, %v1452_v0  ;;  %v1473_v12 = vperm.slane %v1465_v63, %v1942_v34  ;;  %v1570_v63 = vld [vmem:[#allocation7 + $0x18] sm:$0xff] }
 0x3b8   :  { %v1397_v2 = vsel %vm127_vm1, %v1396_v61, %v1379_v43  ;;  %v1408_v5 = vrot.slane %v1395_v23, 4  ;;  %v1411_v14 = vsel %vm127_vm1, %v1395_v23, %v1410_v58  ;;  %v1461_v11 = vperm.slane %v1453_v3, %v1942_v34  ;;  %1594 = vmatpush.msrb.mxu2 %v1570_v63 }
 0x3b9   :  { %v1403_v7 = vperm.slane %v1397_v2, %v1942_v34  ;;  %v1419_v6 = vperm.slane %v1411_v14, %v1942_v34  ;;  %v1422_v56 = vrot.slane %v1407_v55, 4  ;;  %v1451_v30 = vsel %vm127_vm1, %v1450_v1, %v1432_v53  ;;  %v1569_v1 = vld [vmem:[#allocation7 + $0x10] sm:$0xff] }
 0x3ba   :  { %v1409_v20 = vsel %vm127_vm1, %v1408_v5, %v1383_v44  ;;  %v1463_v29 = vsel %vm127_vm1, %v1462_v4, %v1443_v9  ;;  %v1478_v24 = vrot.slane %v1473_v12, 4  ;;  %v1480_v25 = vrot.slane %v1461_v11, 4  ;;  %1595 = vmatpush.msrb.mxu2 %v1569_v1  ;;  %v1567_v4 = vld [vmem:[#allocation7] sm:$0xff] }
 0x3bb   :  { %v1415_v13 = vperm.slane %v1409_v20, %v1942_v34  ;;  %v1420_v28 = vrot.slane %v1403_v7, 4  ;;  %v1423_v18 = vsel %vm127_vm1, 0.0, %v1422_v56  ;;  %v1426_v19 = vrot.slane %v1419_v6, 4 }
 0x3bc   :  { %v1482_v21 = vsel %vm127_vm1, %v1422_v56, %v1403_v7  ;;  %v1487_v22 = vrot.slane %v1423_v18, 4  ;;  %v1479_v36 = vsel %vm127_vm1, %v1478_v24, %v1461_v11  ;;  %v1481_v38 = vsel %vm127_vm1, %v1473_v12, %v1480_v25 }
 0x3bd   :  { %v1421_v26 = vsel %vm127_vm1, 0.0, %v1420_v28  ;;  %v1424_v27 = vrot.slane %v1415_v13, 4  ;;  %v1427_v15 = vsel %vm127_vm1, 0.0, %v1426_v19  ;;  %v1486_v31 = vperm.slane %v1482_v21, %v1920_v17  ;;  %1546 = vrot.lane.b32.xlu1 %v1479_v36, %s1838_s13  ;;  %1554 = vrot.lane.b32.xlu0 %v1481_v38, %s1839_s14 }
 0x3be   :  { %v1498_v35 = vrot.slane %v1427_v15, 4  ;;  %v1457_v39 = vperm.slane %v1451_v30, %v1942_v34  ;;  %v1469_v16 = vperm.slane %v1463_v29, %v1942_v34  ;;  %v1488_v9 = vsel %vm127_vm1, %v1487_v22, %v1421_v26 }
 0x3bf   :  { %v1425_v37 = vsel %vm127_vm1, 0.0, %v1424_v27  ;;  %v1493_v10 = vsel %vm127_vm1, %v1426_v19, %v1415_v13  ;;  %v1492_v42 = vperm.slane %v1488_v9, %v1920_v17  ;;  %v1506_v46 = vrot.slane %v1486_v31, 4  ;;  %v1691_v13 = vld [vmem:[%s2411_s4] ss:$0 sm:$0xff] }
 0x3c0   :  { %v1476_v40 = vrot.slane %v1457_v39, 4  ;;  %v1497_v8 = vperm.slane %v1493_v10, %v1920_v17  ;;  %v1499_v43 = vsel %vm127_vm1, %v1498_v35, %v1425_v37  ;;  %v1474_v44 = vrot.slane %v1469_v16, 4 }
 0x3c1   :  { %v1503_v45 = vperm.slane %v1499_v43, %v1920_v17  ;;  %v1504_v41 = vrot.slane %v1492_v42, 4  ;;  %v1507_v49 = vsel %vm127_vm1, %v1492_v42, %v1506_v46 }
 0x3c2   :  { %v1477_v47 = vsel %vm127_vm1, %v1469_v16, %v1476_v40  ;;  %v1518_v48 = vrot.slane %v1497_v8, 4  ;;  %v1475_v32 = vsel %vm127_vm1, %v1474_v44, %v1457_v39  ;;  %v1515_v33 = vperm.slane %v1507_v49, %v1942_v34 }
 0x3c3   :  { %1538 = vrot.lane.b32.xlu2 %v1477_v47, %s1828_s27  ;;  %v1516_v51 = vrot.slane %v1503_v45, 4  ;;  %v1505_v50 = vsel %vm127_vm1, %v1504_v41, %v1486_v31 }
 0x3c4   :  { %v1519_v52 = vsel %vm127_vm1, %v1503_v45, %v1518_v48  ;;  %v1511_v53 = vperm.slane %v1505_v50, %v1942_v34  ;;  %v1534_v57 = vrot.slane %v1515_v33, 4 }
 0x3c5   :  { %v1527_v17 = vperm.slane %v1519_v52, %v1942_v34  ;;  %v1517_v54 = vsel %vm127_vm1, %v1516_v51, %v1497_v8 }
 0x3c6   :  { %v1523_v58 = vperm.slane %v1517_v54, %v1942_v34  ;;  %v1530_v60 = vrot.slane %v1511_v53, 4  ;;  %v1568_v34 = vld [vmem:[#allocation7 + $0x8] sm:$0xff] }
 0x3c7   :  { %v1532_v59 = vrot.slane %v1527_v17, 4  ;;  %v1535_v23 = vsel %vm127_vm1, %v1527_v17, %v1534_v57  ;;  %1596 = vmatpush.msrb.mxu2 %v1568_v34 }
 0x3c8   :  { %v1528_v61 = vrot.slane %v1523_v58, 4  ;;  %1556 = vrot.lane.b32.xlu1 %v1535_v23, %s1839_s14  ;;  %v1531_v0 = vsel %vm127_vm1, %v1523_v58, %v1530_v60 }
 0x3c9   :  { %v1533_v62 = vsel %vm127_vm1, %v1532_v59, %v1515_v33  ;;  %1597 = vmatpush.msrb.mxu2 %v1567_v4 }
 0x3ca   :  { %1548 = vrot.lane.b32.xlu0 %v1533_v62, %s1838_s13  ;;  %v1529_v55 = vsel %vm127_vm1, %v1528_v61, %v1511_v53 }
 0x3cb   :  { %1540 = vrot.lane.b32.xlu2 %v1531_v0, %s1828_s27 }
 0x41d   :  { %v1539_v2 = vpop.permute.xlu2 %1538 }
 0x41e   :  { %v1560_v5 = vsel %vm835_vm2, %v1475_v32, %v1539_v2 }
 0x425   :  { %v1541_v56 = vpop.permute.xlu2 %1540 }
 0x426   :  { %v1561_v11 = vsel %vm835_vm2, %v1529_v55, %v1541_v56 }
 0x42f   :  { %v1547_v14 = vpop.permute.xlu1 %1546  ;;  %v1555_v3 = vpop.permute.xlu0 %1554 }
 0x430   :  { %v1562_v7 = vsel %vm76_vm0, %v1560_v5, %v1547_v14 }
 0x431   :  { %v1565_v6 = vsel %vm1564_vm3, %v1562_v7, %v1555_v3 }
 0x432   :  { %1653 = vmatmul.msk.f32.vlgmr.msrb.gmra.mxu2 %vm1575_vm4, %v1565_v6 }
 0x43a   :  { %v1557_v12 = vpop.permute.xlu1 %1556 }
 0x43c   :  { %v1549_v20 = vpop.permute.xlu0 %1548 }
 0x43d   :  { %v1563_v30 = vsel %vm76_vm0, %v1561_v11, %v1549_v20 }
 0x43e   :  { %v1566_v29 = vsel %vm1564_vm3, %v1563_v30, %v1557_v12 }
 0x43f   :  { %1654 = vmatmul.msk.f32.gmra.mxu2 %vm1575_vm4, %v1566_v29 }
 0x4b5   :  { %v1599_v28 = vpop.f32.mrf.mxu2 }
 0x4b6   :  { %v1600_v18 = vadd.f32 %v1691_v13, %v1599_v28 }
 0x4b8   :  { %1605 = vst.msk [vmem:[#allocation8] sm:$0xff] %vm1575_vm4, %v1600_v18 }
 0x4c2   :  { %v1602_v19 = vpop.f32.mrf.mxu2 }
 0x4c3   :  { %v1603_v21 = vadd.f32 %v1691_v13, %v1602_v19 }
 0x4c5   :  { %1606 = vst.msk [vmem:[#allocation8 + $0x8] sm:$0xff] %vm1575_vm4, %v1603_v21 }
 0x4c6   :  { %1619 = dma.vmem_to_hbm [thread:$0]  %s1612_s18, 256, %s1614_s21, [#allocation4], %s1827_s26, %s1827_s26, %s1828_s27  }
 0x4c7   :  { %1824 = dma.done.wait [#allocation4], 256  }
 0x4c8   :  { %1825 = vsyncadd [#allocation4], 4294967040 }
 0x4c9   :  { %1624 = vsyncpa [#allocation3], 1 }
 0x4ca   :  { %1625 = vsyncpa [#allocation6], 1 }
 0x4cb   :  { %1626 = vsyncpa [#allocation4], 1 }

</bundles_post_ra>
